<compile_context>
chip_gen: v7x
topology: tpu7x:2x2x1
jax: 0.10.0
libtpu: 0.0.40
codegen_flags: <defaults>
</compile_context>

<pallas_src>
import jax
import jax.numpy as jnp
from jax.experimental import pallas as pl
from jax.experimental.pallas import tpu as pltpu

EPS = 1e-5  # nn.LayerNorm default


def _cdiv(a, b):
    return -(-a // b)


def _round_up(a, b):
    return _cdiv(a, b) * b


def _round_down(a, b):
    return (a // b) * b


def _make_kernel(c, bf16_fast):
    inv_c = 1.0 / float(c)

    def kernel(x_ref, w_ref, b_ref, o_ref):
        # x_ref / o_ref: (NB, C, TS) tile of the (N, C, H*W) view.
        # w_ref / b_ref: (1, C, 1) -> broadcast over batch tile and lanes.
        x = x_ref[...]

        if bf16_fast:
            # Channel sums on the (idle) MXU: ones row-vector matmuls with
            # f32 accumulation keep the VPU slot free for the affine math.
            # 8 ones-rows avoid a degenerate size-1 matmul output; row 0 is
            # used, the rest are free MXU filler.
            nb = x.shape[0]
            ones = jnp.ones((nb, 8, c), dtype=jnp.bfloat16)
            s1 = jnp.einsum("brc,bct->brt", ones, x,
                            preferred_element_type=jnp.float32)[:, 0:1, :]
            s2 = jnp.einsum("brc,bct->brt", ones, x * x,
                            preferred_element_type=jnp.float32)[:, 0:1, :]
            mean = s1 * inv_c                                    # (NB,1,TS) f32
            var = jnp.maximum(s2 * inv_c - mean * mean, 0.0)
            inv = jax.lax.rsqrt(var + EPS)
            # Affine in bf16 (packed 2 elems/lane on v6e/v7x); stats stay f32.
            w = w_ref[...].astype(jnp.bfloat16)
            b = b_ref[...].astype(jnp.bfloat16)
            y = (x - mean.astype(jnp.bfloat16)) * inv.astype(jnp.bfloat16)
            o_ref[...] = (y * w + b).astype(o_ref.dtype)
        else:
            # Generic (f32) path: two-pass statistics in f32 -- same per-elem
            # op count as one-pass (the centered value is reused for the
            # output) and no catastrophic cancellation for offset inputs.
            xf = x.astype(jnp.float32)
            mean = jnp.sum(xf, axis=1, keepdims=True) * inv_c    # (NB,1,TS)
            d = xf - mean
            var = jnp.sum(d * d, axis=1, keepdims=True) * inv_c
            inv = jax.lax.rsqrt(var + EPS)
            w = w_ref[...].astype(jnp.float32)
            b = b_ref[...].astype(jnp.float32)
            o_ref[...] = (d * inv * w + b).astype(o_ref.dtype)

    return kernel


_SMALL_S = 1024    # below this, batch several images per block
_MIN_BLOCKS = 4    # keep both v7x TensorCores (x double buffering) fed


def _choose_tiling(n, c, s, itemsize):
    """Pick (batch-tile NB, spatial-tile TS, scoped-VMEM limit)."""
    # Sublane tile of the input dtype: VMEM stores (C, TS) with C rounded up.
    sub = {4: 8, 2: 16, 1: 32}.get(itemsize, 8)
    c_pad_in = _round_up(c, sub)
    c_pad_f32 = _round_up(c, 8)

    # Per-generation VMEM: 128 MiB (v5e/v6e) vs 64 MiB (v7x).
    try:
        phys = int(pltpu.get_tpu_info().vmem_capacity_bytes)
    except Exception:  # pragma: no cover - conservative fallback
        phys = 128 * 1024 * 1024
    vmem_limit = int(min(100 * 1024 * 1024, (phys * 3) // 4))   # 96 / 48 MiB
    block_budget = vmem_limit // 3                               # pipelining headroom

    # VMEM bytes per (image, spatial position) column of one block:
    #   2x double-buffered input + 2x output tiles (input dtype, padded C)
    #   + ~3 full-tile f32 temporaries Mosaic keeps in internal scratch.
    bytes_per_col = 4 * itemsize * c_pad_in + 3 * 4 * c_pad_f32
    max_cols = max(block_budget // bytes_per_col, 128)

    # Target combined HBM traffic (read+write of real data) per grid step.
    traffic_target = (8 if phys <= 64 * 1024 * 1024 else 16) * 1024 * 1024
    target_cols = max(traffic_target // (2 * c * itemsize), 128)

    cols = int(min(max_cols, target_cols))

    if s >= _SMALL_S or n == 1:
        nb = 1
        ts_cap = max(128, _round_down(cols, 128))
        if s > ts_cap:
            ts = ts_cap
        elif s <= 128 or s % 128 == 0:
            ts = s
        else:
            # Keep the bulk of the stores lane-dense (unmasked vst); only the
            # ragged tail block takes the masked path.
            ts = _round_down(s, 128)
        # Give megacore / the two v7x TensorCores enough blocks to shard.
        while n * _cdiv(s, ts) < _MIN_BLOCKS and ts >= 256:
            ts = max(128, _round_down(_cdiv(ts, 2), 128))
    else:
        # Small feature maps: one (C, s) tile per image is overhead-bound and
        # lane-masked when s < 128 -> batch several images into one block.
        ts = s
        nb = int(max(1, min(n, cols // max(s, 1))))

    return nb, ts, vmem_limit


@jax.jit
def layernorm_nchw(x, weight, bias):
    """x: (N, C, H, W); weight, bias: (C,). LayerNorm over C. Returns NCHW."""
    n, c, h, w = x.shape
    s = h * w
    itemsize = jnp.dtype(x.dtype).itemsize

    # Free contiguous views: no transpose, no padding copies.
    x3 = x.reshape(n, c, s)
    w3 = weight.reshape(1, c, 1)
    b3 = bias.reshape(1, c, 1)

    nb, ts, vmem_limit = _choose_tiling(n, c, s, itemsize)
    grid = (_cdiv(n, nb), _cdiv(s, ts))

    bf16_fast = (x.dtype == jnp.bfloat16)
    kernel = _make_kernel(c, bf16_fast)

    out3 = pl.pallas_call(
        kernel,
        out_shape=jax.ShapeDtypeStruct((n, c, s), x.dtype),
        grid_spec=pltpu.PrefetchScalarGridSpec(
            num_scalar_prefetch=0,
            grid=grid,
            in_specs=[
                pl.BlockSpec((nb, c, ts), lambda bi, si: (bi, 0, si)),
                pl.BlockSpec((1, c, 1), lambda bi, si: (0, 0, 0)),
                pl.BlockSpec((1, c, 1), lambda bi, si: (0, 0, 0)),
            ],
            out_specs=pl.BlockSpec((nb, c, ts), lambda bi, si: (bi, 0, si)),
        ),
        compiler_params=pltpu.CompilerParams(
            # Blocks are fully independent.  Default double buffering kept.
            # If xprof shows no core-level sharding on v7x, switch the batch
            # axis to pltpu.CORE_PARALLEL.
            dimension_semantics=("parallel", "parallel"),
            vmem_limit_bytes=vmem_limit,
        ),
    )(x3, w3, b3)

    return out3.reshape(n, c, h, w)


def _reference(x, weight, bias):
    xf = jnp.transpose(x, (0, 2, 3, 1)).astype(jnp.float32)
    mean = jnp.mean(xf, axis=-1, keepdims=True)
    var = jnp.mean((xf - mean) ** 2, axis=-1, keepdims=True)
    y = (xf - mean) / jnp.sqrt(var + EPS)
    y = y * weight.astype(jnp.float32) + bias.astype(jnp.float32)
    return jnp.transpose(y, (0, 3, 1, 2))


if __name__ == "__main__":
    key = jax.random.PRNGKey(0)
    kx, kw, kb, kx2, kx3 = jax.random.split(key, 5)

    # 1) Primary case (module spec at small shapes): f32 NCHW, batched block.
    N, C, H, W = 2, 4, 16, 16
    x = jax.random.normal(kx, (N, C, H, W), dtype=jnp.float32)
    weight = 1.0 + 0.1 * jax.random.normal(kw, (C,), dtype=jnp.float32)
    bias = 0.1 * jax.random.normal(kb, (C,), dtype=jnp.float32)

    out = jax.block_until_ready(layernorm_nchw(x, weight, bias))
    ref = _reference(x, weight, bias)
    assert out.shape == (N, C, H, W)
    err = float(jnp.max(jnp.abs(out.astype(jnp.float32) - ref)))
    assert err < 1e-4, err

    # 2) Ragged spatial tiling (H*W not a multiple of 128, several tiles) and
    #    a mean offset (exercises the two-pass variance path).
    x2 = 2.0 + jax.random.normal(kx2, (1, 4, 40, 40), dtype=jnp.float32)
    out2 = jax.block_until_ready(layernorm_nchw(x2, weight, bias))
    ref2 = _reference(x2, weight, bias)
    err2 = float(jnp.max(jnp.abs(out2.astype(jnp.float32) - ref2)))
    assert err2 < 1e-4, err2

    # 3) bf16 fast path (MXU channel sums + bf16 affine math).
    Cb = 16
    xb = jax.random.normal(kx3, (2, Cb, 32, 32), dtype=jnp.bfloat16)
    wb = (1.0 + 0.1 * jax.random.normal(kw, (Cb,))).astype(jnp.bfloat16)
    bb = (0.1 * jax.random.normal(kb, (Cb,))).astype(jnp.bfloat16)
    out3 = jax.block_until_ready(layernorm_nchw(xb, wb, bb))
    ref3 = _reference(xb, wb, bb)
    err3 = float(jnp.max(jnp.abs(out3.astype(jnp.float32) - ref3)))
    assert err3 < 2e-1, err3

    print("KERNEL_OK")
</pallas_src>

<mosaic_0001>
module attributes {stable_mosaic.version = 11 : i64} {
  func.func @kernel(%arg0: i32, %arg1: i32, %arg2: memref<2x4x256xf32, #tpu.memory_space<vmem>>, %arg3: memref<1x4x1xf32, #tpu.memory_space<vmem>>, %arg4: memref<1x4x1xf32, #tpu.memory_space<vmem>>, %arg5: memref<2x4x256xf32, #tpu.memory_space<vmem>>) attributes {dimension_semantics = [#tpu.dimension_semantics<parallel>, #tpu.dimension_semantics<parallel>], iteration_bounds = array<i64: 1, 1>, scalar_prefetch = 0 : i64, scratch_operands = 0 : i64, tpu.core_type = #tpu.core_type<tc>, window_params = [{transform_indices = @transform_0, window_bounds = array<i64: 2, 4, 256>}, {pipeline_mode = #tpu.pipeline_mode<synchronous>, transform_indices = @transform_1, window_bounds = array<i64: 1, 4, 1>}, {pipeline_mode = #tpu.pipeline_mode<synchronous>, transform_indices = @transform_2, window_bounds = array<i64: 1, 4, 1>}, {transform_indices = @transform_3, window_bounds = array<i64: 2, 4, 256>}]} {
    %c0 = arith.constant 0 : index
    %c0_0 = arith.constant 0 : index
    %c0_1 = arith.constant 0 : index
    %0 = vector.load %arg2[%c0, %c0_0, %c0_1] : memref<2x4x256xf32, #tpu.memory_space<vmem>>, vector<2x4x256xf32>
    %cst = arith.constant dense<0.000000e+00> : vector<2x256xf32>
    %1 = vector.multi_reduction <add>, %0, %cst [1] : vector<2x4x256xf32> to vector<2x256xf32>
    %2 = vector.shape_cast %1 : vector<2x256xf32> to vector<2x1x256xf32>
    %cst_2 = arith.constant 2.500000e-01 : f32
    %3 = vector.broadcast %cst_2 : f32 to vector<2x1x256xf32>
    %4 = arith.mulf %2, %3 : vector<2x1x256xf32>
    %5 = vector.broadcast %4 : vector<2x1x256xf32> to vector<2x4x256xf32>
    %6 = arith.subf %0, %5 : vector<2x4x256xf32>
    %7 = arith.mulf %6, %6 : vector<2x4x256xf32>
    %cst_3 = arith.constant dense<0.000000e+00> : vector<2x256xf32>
    %8 = vector.multi_reduction <add>, %7, %cst_3 [1] : vector<2x4x256xf32> to vector<2x256xf32>
    %9 = vector.shape_cast %8 : vector<2x256xf32> to vector<2x1x256xf32>
    %cst_4 = arith.constant 2.500000e-01 : f32
    %10 = vector.broadcast %cst_4 : f32 to vector<2x1x256xf32>
    %11 = arith.mulf %9, %10 : vector<2x1x256xf32>
    %cst_5 = arith.constant 9.99999974E-6 : f32
    %12 = vector.broadcast %cst_5 : f32 to vector<2x1x256xf32>
    %13 = arith.addf %11, %12 : vector<2x1x256xf32>
    %14 = math.rsqrt %13 : vector<2x1x256xf32>
    %c0_6 = arith.constant 0 : index
    %c0_7 = arith.constant 0 : index
    %c0_8 = arith.constant 0 : index
    %15 = vector.load %arg3[%c0_6, %c0_7, %c0_8] : memref<1x4x1xf32, #tpu.memory_space<vmem>>, vector<1x4x1xf32>
    %c0_9 = arith.constant 0 : index
    %c0_10 = arith.constant 0 : index
    %c0_11 = arith.constant 0 : index
    %16 = vector.load %arg4[%c0_9, %c0_10, %c0_11] : memref<1x4x1xf32, #tpu.memory_space<vmem>>, vector<1x4x1xf32>
    %17 = vector.broadcast %14 : vector<2x1x256xf32> to vector<2x4x256xf32>
    %18 = arith.mulf %6, %17 : vector<2x4x256xf32>
    %19 = vector.broadcast %15 : vector<1x4x1xf32> to vector<2x4x256xf32>
    %20 = arith.mulf %18, %19 : vector<2x4x256xf32>
    %21 = vector.broadcast %16 : vector<1x4x1xf32> to vector<2x4x256xf32>
    %22 = arith.addf %20, %21 : vector<2x4x256xf32>
    %c0_12 = arith.constant 0 : index
    %c0_13 = arith.constant 0 : index
    %c0_14 = arith.constant 0 : index
    %23 = vector.load %arg5[%c0_12, %c0_13, %c0_14] : memref<2x4x256xf32, #tpu.memory_space<vmem>>, vector<2x4x256xf32>
    tpu.vector_store %arg5[%c0_12, %c0_13, %c0_14], %22 {strides = array<i32>} : memref<2x4x256xf32, #tpu.memory_space<vmem>>, vector<2x4x256xf32>,
    return
  }
  func.func @transform_0(%arg0: i32, %arg1: i32) -> (i32, i32, i32) {
    %c0_i32 = arith.constant 0 : i32
    %c0_i32_0 = arith.constant 0 : i32
    return %arg0, %c0_i32, %arg1 : i32, i32, i32
  }
  func.func @transform_1(%arg0: i32, %arg1: i32) -> (i32, i32, i32) {
    %c0_i32 = arith.constant 0 : i32
    %c0_i32_0 = arith.constant 0 : i32
    %c0_i32_1 = arith.constant 0 : i32
    %c0_i32_2 = arith.constant 0 : i32
    return %c0_i32, %c0_i32_0, %c0_i32_1 : i32, i32, i32
  }
  func.func @transform_2(%arg0: i32, %arg1: i32) -> (i32, i32, i32) {
    %c0_i32 = arith.constant 0 : i32
    %c0_i32_0 = arith.constant 0 : i32
    %c0_i32_1 = arith.constant 0 : i32
    %c0_i32_2 = arith.constant 0 : i32
    return %c0_i32, %c0_i32_0, %c0_i32_1 : i32, i32, i32
  }
  func.func @transform_3(%arg0: i32, %arg1: i32) -> (i32, i32, i32) {
    %c0_i32 = arith.constant 0 : i32
    %c0_i32_0 = arith.constant 0 : i32
    return %arg0, %c0_i32, %arg1 : i32, i32, i32
  }
}

</mosaic_0001>

<bundles_post_ra>
// kernel: layernorm_nchw.1
= control target key start
LH: loop header
LB: loop body
LE: loop exit
PB: predicated region body
PF: predicated region fallthrough
CT: control target
= control target key end

     0   :  { %8 = vsyncpa [#allocation3], 0  ;;  %s421_s0 = inlined_call_operand.hbm [shape: f32[2,4,256], index: 0, kind: input, shape index: {}]   ;;  %s422_s1 = inlined_call_operand.hbm [shape: f32[1,4,1], index: 1, kind: input, shape index: {}]   ;;  %s423_s2 = inlined_call_operand.hbm [shape: f32[1,4,1], index: 2, kind: input, shape index: {}]   ;;  %s424_s3 = inlined_call_operand.hbm [shape: f32[2,4,256], index: 3, kind: output, shape index: {}]  }
   0x1   :  { %9 = vsyncpa [#allocation6], 0 }
   0x2   :  { %10 = vsyncpa [#allocation4], 0  ;;  %s324_s12 = smov [#allocation5]   ;;  %s325_s14 = smov [#allocation2]  }
   0x3   :  { %s29_s13 = sshll.u32 %s324_s12, 4  ;;  %s16_s15 = sshll.u32 %s325_s14, 4  ;;  %s30_s13 = int_to_ptr.vmem [resolvable:$true] %s29_s13  ;;  %s352_s15 = int_to_ptr.vmem [resolvable:$true] %s16_s15 }
   0x4   :  { %s230_s18 = scalar_lea.hbm %s422_s1, 64 }
   0x5   :  { %p231_p0 = scmp.ne.s32.totalorder %s422_s1, %s230_s18  ;;  %p234_p1 = scmp.lt.u32.totalorder %s230_s18, %s422_s1 }
   0x7   :  { %p236_p2 = pnand %p234_p1, %p231_p0 }
   0x9   :  { %239 = shalt.err (!%p236_p2)
}
   0xa   :  { %s240_s23 = scalar_lea.vmem %s30_s13, 64  ;;  %p245_p4 = scmp.lt.s32.totalorder %s30_s13, %s30_s13 }
   0xb   :  { %p241_p3 = scmp.ne.s32.totalorder %s30_s13, %s240_s23  ;;  %p246_p5 = scmp.lt.s32.totalorder %s240_s23, %s240_s23 }
   0xd   :  { %p247_p6 = por %p246_p5, %p245_p4 }
   0xf   :  { %p248_p7 = pnand %p247_p6, %p241_p3 }
  0x11   :  { %251 = shalt.err (!%p248_p7)
}
  0x12   :  { %32 = dma.hbm_to_vmem [thread:$0]  %s422_s1, 64, %s30_s13, [#allocation6]  }
  0x13   :  { %s252_s28 = scalar_lea.hbm %s421_s0, 256 }
  0x14   :  { %p253_p8 = scmp.ne.s32.totalorder %s421_s0, %s252_s28  ;;  %p256_p9 = scmp.lt.u32.totalorder %s252_s28, %s421_s0 }
  0x16   :  { %p258_p10 = pnand %p256_p9, %p253_p8 }
  0x18   :  { %261 = shalt.err (!%p258_p10)
}
  0x19   :  { %s262_s6 = scalar_lea.vmem %s352_s15, 256  ;;  %p267_p12 = scmp.lt.s32.totalorder %s352_s15, %s352_s15 }
  0x1a   :  { %p263_p11 = scmp.ne.s32.totalorder %s352_s15, %s262_s6  ;;  %p268_p13 = scmp.lt.s32.totalorder %s262_s6, %s262_s6 }
  0x1c   :  { %p269_p0 = por %p268_p13, %p267_p12 }
  0x1e   :  { %p270_p1 = pnand %p269_p0, %p263_p11 }
  0x20   :  { %273 = shalt.err (!%p270_p1)
}
  0x21   :  { %s326_s1 = smov 128   ;;  %s327_s7 = smov 8  }
  0x22   :  { %22 = dma.hbm_to_vmem [thread:$0]  %s421_s0, 256, %s352_s15, [#allocation3], %s326_s1, %s326_s1, %s327_s7  }
  0x23   :  { %s328_s10 = smov [#allocation7]   ;;  %s274_s14 = scalar_lea.hbm %s423_s2, 64 }
  0x24   :  { %s39_s11 = sshll.u32 %s328_s10, 4  ;;  %p275_p2 = scmp.ne.s32.totalorder %s423_s2, %s274_s14  ;;  %s40_s11 = int_to_ptr.vmem [resolvable:$true] %s39_s11 }
  0x25   :  { %p278_p3 = scmp.lt.u32.totalorder %s274_s14, %s423_s2 }
  0x27   :  { %p280_p4 = pnand %p278_p3, %p275_p2 }
  0x29   :  { %283 = shalt.err (!%p280_p4)
}
  0x2a   :  { %s284_s20 = scalar_lea.vmem %s40_s11, 64  ;;  %p289_p6 = scmp.lt.s32.totalorder %s40_s11, %s40_s11 }
  0x2b   :  { %p285_p5 = scmp.ne.s32.totalorder %s40_s11, %s284_s20  ;;  %p290_p7 = scmp.lt.s32.totalorder %s284_s20, %s284_s20 }
  0x2d   :  { %p291_p8 = por %p290_p7, %p289_p6 }
  0x2f   :  { %p292_p9 = pnand %p291_p8, %p285_p5 }
  0x31   :  { %295 = shalt.err (!%p292_p9)
}
  0x32   :  { %42 = dma.hbm_to_vmem [thread:$0]  %s423_s2, 64, %s40_s11, [#allocation6]  }
  0x33   :  { %318 = dma.done.wait [#allocation3], 256  }
  0x34   :  { %319 = vsyncadd [#allocation3], 4294967040 }
  0x35   :  { %320 = dma.done.wait [#allocation6], 128  }
  0x36   :  { %321 = vsyncadd [#allocation6], 4294967168  ;;  %v329_v0 = vmov 0   ;;  %v151_v1 = vld [vmem:[#allocation5] sm:$0xf]  ;;  %v52_v3 = vld [vmem:[#allocation2] sm:$0xff] }
  0x37   :  { %219 = vset.pattern.permute.xlu0 %v329_v0  ;;  %v152_v2 = vld [vmem:[#allocation7] sm:$0xf]  ;;  %v53_v4 = vld [vmem:[#allocation2 + $0x8] sm:$0xff]  ;;  %v56_v5 = vcombine.high %v52_v3, %v52_v3  ;;  %vm60_vm0 = vcmask 1043456   ;;  %s331_s2 = smov [#allocation8]  }
  0x38   :  { %165 = vperm.xlu0 %219, %v151_v1   ;;  %v57_v6 = vcombine.high %v53_v4, %v53_v4  ;;  %v61_v7 = vsel %vm60_vm0, %v52_v3, 0.0  ;;  %v75_v9 = vsel %vm60_vm0, %v53_v4, 0.0  ;;  %s198_s21 = sshll.u32 %s331_s2, 4  ;;  %s199_s21 = int_to_ptr.vmem [resolvable:$true] %s198_s21 }
  0x39   :  { %v68_v8 = vsel %vm60_vm0, %v56_v5, 0.0  ;;  %v62_v11 = vrot.slane %v61_v7, 4  ;;  %v76_v13 = vrot.slane %v75_v9, 4  ;;  %s296_s22 = scalar_lea.vmem %s199_s21, 256  ;;  %p301_p11 = scmp.lt.s32.totalorder %s199_s21, %s199_s21 }
  0x3a   :  { %v82_v10 = vsel %vm60_vm0, %v57_v6, 0.0  ;;  %v69_v12 = vrot.slane %v68_v8, 4  ;;  %p297_p10 = scmp.ne.s32.totalorder %s199_s21, %s296_s22  ;;  %p302_p12 = scmp.lt.s32.totalorder %s296_s22, %s296_s22 }
  0x3b   :  { %v83_v14 = vrot.slane %v82_v10, 4  ;;  %v63_v15 = vadd.f32 %v62_v11, %v61_v7  ;;  %v77_v17 = vadd.f32 %v76_v13, %v75_v9 }
  0x3c   :  { %179 = vperm.xlu0 %219, %v152_v2   ;;  %v70_v16 = vadd.f32 %v69_v12, %v68_v8  ;;  %p303_p13 = por %p302_p12, %p301_p11 }
  0x3d   :  { %v84_v18 = vadd.f32 %v83_v14, %v82_v10  ;;  %v64_v19 = vrot.slane %v63_v15, 2  ;;  %v78_v21 = vrot.slane %v77_v17, 2 }
  0x3e   :  { %v71_v20 = vrot.slane %v70_v16, 2  ;;  %p304_p0 = pnand %p303_p13, %p297_p10 }
  0x3f   :  { %v85_v22 = vrot.slane %v84_v18, 2  ;;  %v65_v23 = vadd.f32 %v64_v19, %v63_v15  ;;  %v79_v25 = vadd.f32 %v78_v21, %v77_v17  ;;  %v330_v19 = vmov 839922192  }
  0x40   :  { %v72_v24 = vadd.f32 %v71_v20, %v70_v16  ;;  %v168_v20 = vunpack.c.l.s4 %v330_v19  ;;  %v170_v21 = vlaneseq }
  0x41   :  { %v86_v26 = vadd.f32 %v85_v22, %v84_v18  ;;  %v66_v27 = vrot.slane %v65_v23, 1  ;;  %v80_v29 = vrot.slane %v79_v25, 1 }
  0x42   :  { %v73_v28 = vrot.slane %v72_v24, 1 }
  0x43   :  { %v87_v30 = vrot.slane %v86_v26, 1  ;;  %v67_v31 = vadd.f32 %v66_v27, %v65_v23  ;;  %v81_v33 = vadd.f32 %v80_v29, %v79_v25  ;;  %v169_v25 = vunpack.c.0.s8 %v168_v20 }
  0x44   :  { %v74_v32 = vadd.f32 %v73_v28, %v72_v24 }
  0x45   :  { %v88_v34 = vadd.f32 %v87_v30, %v86_v26  ;;  %v89_v35 = vmul.f32 0.25, %v67_v31  ;;  %v91_v37 = vmul.f32 0.25, %v81_v33  ;;  %v171_v26 = vshrl.u32 %v170_v21, 7 }
  0x46   :  { %v90_v36 = vmul.f32 0.25, %v74_v32 }
  0x47   :  { %v92_v38 = vmul.f32 0.25, %v88_v34  ;;  %v172_v28 = vsub.s32 %v169_v25, %v171_v26 }
  0x48   :  { %v97_v39 = vcombine.low %v89_v35, %v90_v36 }
  0x49   :  { %v98_v40 = vcombine.low %v91_v37, %v92_v38 }
  0x4a   :  { %v101_v41 = vsub.f32 %v52_v3, %v97_v39 }
  0x4b   :  { %v102_v42 = vsub.f32 %v53_v4, %v98_v40 }
  0x4c   :  { %v103_v43 = vmul.f32 %v101_v41, %v101_v41 }
  0x4d   :  { %v104_v44 = vmul.f32 %v102_v42, %v102_v42 }
  0x4e   :  { %v107_v45 = vcombine.high %v103_v43, %v103_v43  ;;  %v111_v47 = vsel %vm60_vm0, %v103_v43, 0.0 }
  0x4f   :  { %v108_v46 = vcombine.high %v104_v44, %v104_v44  ;;  %v125_v48 = vsel %vm60_vm0, %v104_v44, 0.0  ;;  %v112_v50 = vrot.slane %v111_v47, 4 }
  0x50   :  { %v118_v49 = vsel %vm60_vm0, %v107_v45, 0.0  ;;  %v126_v52 = vrot.slane %v125_v48, 4 }
  0x51   :  { %v132_v51 = vsel %vm60_vm0, %v108_v46, 0.0  ;;  %v119_v53 = vrot.slane %v118_v49, 4  ;;  %v113_v55 = vadd.f32 %v112_v50, %v111_v47 }
  0x52   :  { %v133_v54 = vrot.slane %v132_v51, 4  ;;  %v127_v56 = vadd.f32 %v126_v52, %v125_v48 }
  0x53   :  { %v120_v57 = vadd.f32 %v119_v53, %v118_v49  ;;  %v114_v59 = vrot.slane %v113_v55, 2 }
  0x54   :  { %v134_v58 = vadd.f32 %v133_v54, %v132_v51  ;;  %v128_v60 = vrot.slane %v127_v56, 2 }
  0x55   :  { %v121_v61 = vrot.slane %v120_v57, 2  ;;  %v115_v63 = vadd.f32 %v114_v59, %v113_v55 }
  0x56   :  { %v135_v62 = vrot.slane %v134_v58, 2  ;;  %v129_v0 = vadd.f32 %v128_v60, %v127_v56 }
  0x57   :  { %v122_v1 = vadd.f32 %v121_v61, %v120_v57  ;;  %v116_v3 = vrot.slane %v115_v63, 1 }
  0x58   :  { %v136_v2 = vadd.f32 %v135_v62, %v134_v58  ;;  %v130_v4 = vrot.slane %v129_v0, 1 }
  0x59   :  { %v123_v5 = vrot.slane %v122_v1, 1  ;;  %v117_v7 = vadd.f32 %v116_v3, %v115_v63 }
  0x5a   :  { %v137_v6 = vrot.slane %v136_v2, 1  ;;  %v131_v8 = vadd.f32 %v130_v4, %v129_v0 }
  0x5b   :  { %v124_v9 = vadd.f32 %v123_v5, %v122_v1  ;;  %v139_v11 = vmul.f32 0.25, %v117_v7 }
  0x5c   :  { %v138_v10 = vadd.f32 %v137_v6, %v136_v2  ;;  %v141_v12 = vmul.f32 0.25, %v131_v8 }
  0x5d   :  { %v140_v13 = vmul.f32 0.25, %v124_v9  ;;  %v143_v15 = vadd.f32 1e-05, %v139_v11 }
  0x5e   :  { %v142_v14 = vmul.f32 0.25, %v138_v10  ;;  %v145_v16 = vadd.f32 1e-05, %v141_v12 }
  0x5f   :  { %v144_v17 = vadd.f32 1e-05, %v140_v13  ;;  %222 = vrsqrt.f32 %v143_v15 }
  0x60   :  { %v146_v18 = vadd.f32 1e-05, %v142_v14  ;;  %224 = vrsqrt.f32 %v145_v16 }
  0x61   :  { %226 = vrsqrt.f32 %v144_v17 }
  0x62   :  { %228 = vrsqrt.f32 %v146_v18 }
  0x69   :  { %v223_v22 = vpop.eup %222 }
  0x6a   :  { %v225_v23 = vpop.eup %224 }
  0x6b   :  { %v227_v24 = vpop.eup %226 }
  0x6c   :  { %v229_v27 = vpop.eup %228  ;;  %v157_v29 = vcombine.low %v223_v22, %v227_v24 }
  0x6d   :  { %v158_v30 = vcombine.low %v225_v23, %v229_v27 }
  0x6e   :  { %v161_v32 = vmul.f32 %v157_v29, %v101_v41 }
  0x6f   :  { %v162_v33 = vmul.f32 %v158_v30, %v102_v42 }
  0xb7   :  { %v166_v31 = vpop.permute.xlu0 %165 }
  0xb8   :  { %v173_v34 = vrot.slane %v166_v31, %v172_v28 }
  0xba   :  { %v175_v36 = vmul.f32 %v173_v34, %v161_v32  ;;  %v176_v37 = vmul.f32 %v173_v34, %v162_v33 }
  0xbb   :  { %v180_v35 = vpop.permute.xlu0 %179 }
  0xbc   :  { %v187_v38 = vrot.slane %v180_v35, %v172_v28 }
  0xbe   :  { %v189_v39 = vadd.f32 %v187_v38, %v175_v36  ;;  %v190_v40 = vadd.f32 %v187_v38, %v176_v37 }
  0xc0   :  { %191 = vst [vmem:[#allocation8] sm:$0xff] %v189_v39  ;;  %192 = vst [vmem:[#allocation8 + $0x8] sm:$0xff] %v190_v40 }
  0xc1   :  { %307 = shalt.err (!%p304_p0)
}
  0xc2   :  { %s308_s25 = scalar_lea.hbm %s424_s3, 256 }
  0xc3   :  { %p309_p1 = scmp.ne.s32.totalorder %s424_s3, %s308_s25  ;;  %p312_p2 = scmp.lt.u32.totalorder %s308_s25, %s424_s3 }
  0xc5   :  { %p314_p3 = pnand %p312_p2, %p309_p1 }
  0xc7   :  { %317 = shalt.err (!%p314_p3)
}
  0xc8   :  { %204 = dma.vmem_to_hbm [thread:$0]  %s199_s21, 256, %s424_s3, [#allocation4], %s326_s1, %s326_s1, %s327_s7  }
  0xc9   :  { %322 = dma.done.wait [#allocation4], 256  }
  0xca   :  { %323 = vsyncadd [#allocation4], 4294967040 }
  0xcb   :  { %208 = vsyncpa [#allocation3], 1 }
  0xcc   :  { %209 = vsyncpa [#allocation6], 1 }
  0xcd   :  { %210 = vsyncpa [#allocation4], 1 }

</bundles_post_ra>
